<compile_context>
chip_gen: v7x
topology: tpu7x:2x2x1
jax: 0.10.0
libtpu: 0.0.40
codegen_flags: <defaults>
</compile_context>

<pallas_src>
import jax
import jax.numpy as jnp
from jax.experimental import pallas as pl
from jax.experimental.pallas import tpu as pltpu

# ----------------------------- model config ---------------------------------
DIM      = 32                 # input channels
MULT     = 4
FF_INNER = DIM * MULT         # 128, GEGLU inner dim (lane-tile aligned)
DIM_OUT  = DIM                # dim_out defaults to dim
PAD_OUT  = 128                # lane-dense padded output width (multiple of 128)

B = 2                         # batch  (module-spec small shape)
S = 8                         # sequence length

ROW_TILE = 512                # row tile for the gridded (large-BS) path


# ----------------------------- in-kernel math --------------------------------
def _gelu_exact(x):
    # F.gelu default (approximate='none', erf-based)
    return 0.5 * x * (1.0 + jax.lax.erf(x * (2.0 ** -0.5)))


# ------------------------------ Pallas kernel --------------------------------
def ff_kernel(x_ref, wp_ref, wf_ref, b_ref, out_ref):
    # x:  (TM, DIM)            f32 activations
    # wp: (DIM, 2*FF_INNER)    bf16, pre-transposed (in, out)
    # wf: (FF_INNER, PAD_OUT)  bf16, zero-padded beyond DIM_OUT
    # b:  (2, 2*FF_INNER)      f32; row 0 = proj bias, row 1[:PAD_OUT] = out bias (padded)
    x = x_ref[...].astype(jnp.bfloat16)

    proj = jnp.dot(x, wp_ref[...], preferred_element_type=jnp.float32) + b_ref[0:1, :]

    # GEGLU chunk along the last dim; FF_INNER == 128 so both halves are
    # 128-lane tile-aligned slices (no cross-lane shuffles).
    h    = proj[:, :FF_INNER]
    gate = proj[:, FF_INNER:]
    act  = (h * _gelu_exact(gate)).astype(jnp.bfloat16)

    # nn.Dropout(p=0.0) is the identity at inference time.
    out_ref[...] = (jnp.dot(act, wf_ref[...], preferred_element_type=jnp.float32)
                    + b_ref[1:2, :PAD_OUT])


# ------------------------------- wrapper --------------------------------------
def feed_forward(x, params, *, row_tile=ROW_TILE):
    """x: (B, S, DIM) float32.  params: (wp_bf16, wf_pad_bf16, b_stack_f32)."""
    wp, wf_pad, b_stack = params
    Bsz, Sq, D = x.shape
    BS = Bsz * Sq

    # Fold batch into rows (sublanes); all tokens share one weight-resident call.
    x2 = x.reshape(BS, D)

    if BS <= row_tile:
        # Small-token path: single gridless invocation, everything VMEM-resident.
        vmem = pl.BlockSpec(memory_space=pltpu.MemorySpace.VMEM)
        out = pl.pallas_call(
            ff_kernel,
            out_shape=jax.ShapeDtypeStruct((BS, PAD_OUT), jnp.float32),
            in_specs=[vmem, vmem, vmem, vmem],
            out_specs=vmem,
        )(x2, wp, wf_pad, b_stack)
    else:
        # Large-token path: parallel 1-D row grid (uses both TCs on v7x),
        # weights/biases pinned with constant index_maps (no per-step re-DMA).
        n_tiles = pl.cdiv(BS, row_tile)
        BS_pad = n_tiles * row_tile
        if BS_pad != BS:
            x2 = jnp.pad(x2, ((0, BS_pad - BS), (0, 0)))
        out = pl.pallas_call(
            ff_kernel,
            out_shape=jax.ShapeDtypeStruct((BS_pad, PAD_OUT), jnp.float32),
            grid=(n_tiles,),
            in_specs=[
                pl.BlockSpec((row_tile, D),             lambda i: (i, 0)),
                pl.BlockSpec((D, 2 * FF_INNER),         lambda i: (0, 0)),
                pl.BlockSpec((FF_INNER, PAD_OUT),       lambda i: (0, 0)),
                pl.BlockSpec((2, 2 * FF_INNER),         lambda i: (0, 0)),
            ],
            out_specs=pl.BlockSpec((row_tile, PAD_OUT), lambda i: (i, 0)),
            compiler_params=pltpu.CompilerParams(
                dimension_semantics=("parallel",)),
        )(x2, wp, wf_pad, b_stack)
        out = out[:BS]

    # Strip the lane padding and restore (B, S, DIM_OUT) — wrapper-side layout only.
    # (A fused consumer could instead take the padded (BS, 128) slab directly.)
    return out[:, :DIM_OUT].reshape(Bsz, Sq, DIM_OUT)


# ---------------------------- parameter init -----------------------------------
def init_params(key):
    """Deterministic synthetic parameters.

    Returns (kernel_params, ref_params):
      kernel_params = (wp_bf16 (DIM,2*INNER), wf_pad_bf16 (INNER,PAD_OUT),
                       b_stack_f32 (2, 2*INNER))
      ref_params    = full-f32 unpadded (wp, bp, wf, bf) for module-semantics ref.
    """
    k1, k2, k3, k4 = jax.random.split(key, 4)

    wp = 0.05 * jax.random.normal(k1, (DIM, 2 * FF_INNER), jnp.float32)
    bp = 0.05 * jax.random.normal(k2, (2 * FF_INNER,), jnp.float32)
    wf = 0.05 * jax.random.normal(k3, (FF_INNER, DIM_OUT), jnp.float32)
    bf = 0.05 * jax.random.normal(k4, (DIM_OUT,), jnp.float32)

    # Zero-pad the output projection to a full 128-lane tile (lane-dense store),
    # store MXU operands in bf16 (native input dtype; halves weight DMA bytes).
    wf_pad = jnp.zeros((FF_INNER, PAD_OUT), jnp.float32).at[:, :DIM_OUT].set(wf)
    bf_pad = jnp.zeros((PAD_OUT,), jnp.float32).at[:DIM_OUT].set(bf)

    # Stack both biases into one array -> one fewer DMA descriptor.
    b_stack = jnp.zeros((2, 2 * FF_INNER), jnp.float32)
    b_stack = b_stack.at[0, :].set(bp).at[1, :PAD_OUT].set(bf_pad)

    kernel_params = (wp.astype(jnp.bfloat16), wf_pad.astype(jnp.bfloat16), b_stack)
    ref_params = (wp, bp, wf, bf)
    return kernel_params, ref_params


# ---------------------------- pure-JAX references --------------------------------
def feed_forward_ref_kernel_math(x, kernel_params):
    """Mirrors the kernel's bf16-input / f32-accumulate math in plain JAX."""
    wp, wf_pad, b = kernel_params
    Bsz, Sq, D = x.shape
    x2 = x.reshape(Bsz * Sq, D).astype(jnp.bfloat16)
    proj = jnp.dot(x2, wp, preferred_element_type=jnp.float32) + b[0:1, :]
    h, gate = proj[:, :FF_INNER], proj[:, FF_INNER:]
    act = (h * _gelu_exact(gate)).astype(jnp.bfloat16)
    out = jnp.dot(act, wf_pad, preferred_element_type=jnp.float32) + b[1:2, :PAD_OUT]
    return out[:, :DIM_OUT].reshape(Bsz, Sq, DIM_OUT)


def feed_forward_ref_f32(x, ref_params):
    """Full-f32 module semantics (PyTorch FeedForward with dropout=0)."""
    wp, bp, wf, bf = ref_params
    hp = jax.lax.Precision.HIGHEST
    proj = jnp.einsum("bsd,df->bsf", x, wp, precision=hp) + bp
    h, gate = proj[..., :FF_INNER], proj[..., FF_INNER:]
    act = h * _gelu_exact(gate)
    return jnp.einsum("bsf,fo->bso", act, wf, precision=hp) + bf


# --------------------------------- main ----------------------------------------
if __name__ == "__main__":
    key = jax.random.PRNGKey(0)
    k_x, k_p, k_x2 = jax.random.split(key, 3)

    params, ref_params = init_params(k_p)

    # --- small shape (module spec): B=2, S=8, dim=32 -> gridless single-call path
    hidden_states = jax.random.normal(k_x, (B, S, DIM), jnp.float32)
    out = feed_forward(hidden_states, params)
    jax.block_until_ready(out)

    assert out.shape == (B, S, DIM_OUT)
    assert bool(jnp.all(jnp.isfinite(out)))

    err_kernel_math = float(jnp.max(jnp.abs(
        out - feed_forward_ref_kernel_math(hidden_states, params))))
    assert err_kernel_math < 1e-3, f"mismatch vs bf16-math reference: {err_kernel_math}"

    err_f32 = float(jnp.max(jnp.abs(
        out - feed_forward_ref_f32(hidden_states, ref_params))))
    assert err_f32 < 2e-2, f"mismatch vs f32 module reference: {err_f32}"

    # --- larger token count -> exercises the parallel row-grid path (v7x: 2 TCs),
    # with BS not a multiple of the row tile (tests padding path).
    x_big = jax.random.normal(k_x2, (4, 300, DIM), jnp.float32)   # BS = 1200
    out_big = feed_forward(x_big, params)
    jax.block_until_ready(out_big)
    assert out_big.shape == (4, 300, DIM_OUT)
    assert bool(jnp.all(jnp.isfinite(out_big)))
    err_big = float(jnp.max(jnp.abs(
        out_big - feed_forward_ref_kernel_math(x_big, params))))
    assert err_big < 1e-3, f"mismatch (grid path) vs bf16-math reference: {err_big}"

    print("KERNEL_OK")
</pallas_src>

<mosaic_0001>
module attributes {stable_mosaic.version = 11 : i64} {
  func.func @ff_kernel(%arg0: memref<16x32xf32, #tpu.memory_space<vmem>>, %arg1: memref<32x256xbf16, #tpu.memory_space<vmem>>, %arg2: memref<128x128xbf16, #tpu.memory_space<vmem>>, %arg3: memref<2x256xf32, #tpu.memory_space<vmem>>, %arg4: memref<16x128xf32, #tpu.memory_space<vmem>>) attributes {dimension_semantics = [], scalar_prefetch = 0 : i64, scratch_operands = 0 : i64, tpu.core_type = #tpu.core_type<tc>} {
    %c0 = arith.constant 0 : index
    %c0_0 = arith.constant 0 : index
    %0 = vector.load %arg0[%c0, %c0_0] : memref<16x32xf32, #tpu.memory_space<vmem>>, vector<16x32xf32>
    %1 = arith.truncf %0 : vector<16x32xf32> to vector<16x32xbf16>
    %c0_1 = arith.constant 0 : index
    %c0_2 = arith.constant 0 : index
    %2 = vector.load %arg1[%c0_1, %c0_2] : memref<32x256xbf16, #tpu.memory_space<vmem>>, vector<32x256xbf16>
    %cst = arith.constant dense<0.000000e+00> : vector<16x256xf32>
    %3 = tpu.matmul %1, %2, %cst {dimension_numbers = #tpu.dot_dimension_numbers<[1], [0], [0], [1], [0, 0, 1, 1], [], []>} : vector<16x32xbf16>, vector<32x256xbf16>, vector<16x256xf32> -> vector<16x256xf32>
    %c0_3 = arith.constant 0 : index
    %c0_4 = arith.constant 0 : index
    %4 = vector.load %arg3[%c0_3, %c0_4] : memref<2x256xf32, #tpu.memory_space<vmem>>, vector<1x256xf32>
    %5 = vector.broadcast %4 : vector<1x256xf32> to vector<16x256xf32>
    %6 = arith.addf %3, %5 : vector<16x256xf32>
    %7 = vector.extract_strided_slice %6 {offsets = [0, 0], sizes = [16, 128], strides = [1, 1]} : vector<16x256xf32> to vector<16x128xf32>
    %8 = vector.extract_strided_slice %6 {offsets = [0, 128], sizes = [16, 128], strides = [1, 1]} : vector<16x256xf32> to vector<16x128xf32>
    %cst_5 = arith.constant 5.000000e-01 : f32
    %9 = vector.broadcast %cst_5 : f32 to vector<16x128xf32>
    %10 = arith.mulf %9, %8 : vector<16x128xf32>
    %cst_6 = arith.constant 0.707106769 : f32
    %11 = vector.broadcast %cst_6 : f32 to vector<16x128xf32>
    %12 = arith.mulf %8, %11 : vector<16x128xf32>
    %13 = math.erf %12 : vector<16x128xf32>
    %cst_7 = arith.constant 1.000000e+00 : f32
    %14 = vector.broadcast %cst_7 : f32 to vector<16x128xf32>
    %15 = arith.addf %14, %13 : vector<16x128xf32>
    %16 = arith.mulf %10, %15 : vector<16x128xf32>
    %17 = arith.mulf %7, %16 : vector<16x128xf32>
    %18 = arith.truncf %17 : vector<16x128xf32> to vector<16x128xbf16>
    %c0_8 = arith.constant 0 : index
    %c0_9 = arith.constant 0 : index
    %19 = vector.load %arg2[%c0_8, %c0_9] : memref<128x128xbf16, #tpu.memory_space<vmem>>, vector<128x128xbf16>
    %cst_10 = arith.constant dense<0.000000e+00> : vector<16x128xf32>
    %20 = tpu.matmul %18, %19, %cst_10 {dimension_numbers = #tpu.dot_dimension_numbers<[1], [0], [0], [1], [0, 0, 1, 1], [], []>} : vector<16x128xbf16>, vector<128x128xbf16>, vector<16x128xf32> -> vector<16x128xf32>
    %c1 = arith.constant 1 : index
    %c0_11 = arith.constant 0 : index
    %21 = vector.load %arg3[%c1, %c0_11] : memref<2x256xf32, #tpu.memory_space<vmem>>, vector<1x128xf32>
    %22 = vector.broadcast %21 : vector<1x128xf32> to vector<16x128xf32>
    %23 = arith.addf %20, %22 : vector<16x128xf32>
    %c0_12 = arith.constant 0 : index
    %c0_13 = arith.constant 0 : index
    %24 = vector.load %arg4[%c0_12, %c0_13] : memref<16x128xf32, #tpu.memory_space<vmem>>, vector<16x128xf32>
    tpu.vector_store %arg4[%c0_12, %c0_13], %23 {strides = array<i32>} : memref<16x128xf32, #tpu.memory_space<vmem>>, vector<16x128xf32>,
    return
  }
}

</mosaic_0001>

<bundles_post_ra>
// kernel: tpu_custom_call.1
= control target key start
LH: loop header
LB: loop body
LE: loop exit
PB: predicated region body
PF: predicated region fallthrough
CT: control target
= control target key end

     0   :  { %9 = vsyncpa [#allocation3], 0  ;;  %s561_s0 = inlined_call_operand.hbm [shape: f32[16,32], index: 0, kind: input, shape index: {}]   ;;  %s562_s1 = inlined_call_operand.hbm [shape: bf16[32,256], index: 1, kind: input, shape index: {}]   ;;  %s563_s2 = inlined_call_operand.hbm [shape: bf16[128,128], index: 2, kind: input, shape index: {}]   ;;  %s564_s3 = inlined_call_operand.vmem [shape: f32[2,256], index: 3, kind: input, shape index: {}]   ;;  %s565_s4 = inlined_call_operand.hbm [shape: f32[16,128], index: 4, kind: output, shape index: {}]  }
   0x1   :  { %10 = vsyncpa [#allocation6], 0 }
   0x2   :  { %11 = vsyncpa [#allocation4], 0  ;;  %s455_s15 = smov [#allocation5]   ;;  %s456_s17 = smov [#allocation2]  }
   0x3   :  { %s29_s16 = sshll.u32 %s455_s15, 4  ;;  %s17_s18 = sshll.u32 %s456_s17, 4  ;;  %s30_s16 = int_to_ptr.vmem [resolvable:$true] %s29_s16  ;;  %s491_s18 = int_to_ptr.vmem [resolvable:$true] %s17_s18 }
   0x4   :  { %s361_s21 = scalar_lea.hbm %s562_s1, 512 }
   0x5   :  { %p362_p0 = scmp.ne.s32.totalorder %s562_s1, %s361_s21  ;;  %p365_p1 = scmp.lt.u32.totalorder %s361_s21, %s562_s1 }
   0x7   :  { %p367_p2 = pnand %p365_p1, %p362_p0 }
   0x9   :  { %370 = shalt.err (!%p367_p2)
}
   0xa   :  { %s371_s26 = scalar_lea.vmem %s30_s16, 512  ;;  %p376_p4 = scmp.lt.s32.totalorder %s30_s16, %s30_s16 }
   0xb   :  { %p372_p3 = scmp.ne.s32.totalorder %s30_s16, %s371_s26  ;;  %p377_p5 = scmp.lt.s32.totalorder %s371_s26, %s371_s26 }
   0xd   :  { %p378_p6 = por %p377_p5, %p376_p4 }
   0xf   :  { %p379_p7 = pnand %p378_p6, %p372_p3 }
  0x11   :  { %382 = shalt.err (!%p379_p7)
}
  0x12   :  { %s457_s27 = smov 128   ;;  %s458_s28 = smov 8  }
  0x13   :  { %35 = dma.hbm_to_vmem [thread:$0]  %s562_s1, 512, %s30_s16, [#allocation6], %s457_s27, %s457_s27, %s458_s28  }
  0x14   :  { %s383_s7 = scalar_lea.hbm %s561_s0, 256 }
  0x15   :  { %p384_p8 = scmp.ne.s32.totalorder %s561_s0, %s383_s7  ;;  %p387_p9 = scmp.lt.u32.totalorder %s383_s7, %s561_s0 }
  0x17   :  { %p389_p10 = pnand %p387_p9, %p384_p8 }
  0x19   :  { %392 = shalt.err (!%p389_p10)
}
  0x1a   :  { %s393_s12 = scalar_lea.vmem %s491_s18, 256  ;;  %p398_p12 = scmp.lt.s32.totalorder %s491_s18, %s491_s18 }
  0x1b   :  { %p394_p11 = scmp.ne.s32.totalorder %s491_s18, %s393_s12  ;;  %p399_p13 = scmp.lt.s32.totalorder %s393_s12, %s393_s12 }
  0x1d   :  { %p400_p0 = por %p399_p13, %p398_p12 }
  0x1f   :  { %p401_p1 = pnand %p400_p0, %p394_p11 }
  0x21   :  { %404 = shalt.err (!%p401_p1)
}
  0x22   :  { %23 = dma.hbm_to_vmem [thread:$0]  %s561_s0, 256, %s491_s18, [#allocation3], %s457_s27, %s457_s27, %s458_s28  }
  0x23   :  { %s459_s14 = smov [#allocation7]   ;;  %s405_s19 = scalar_lea.hbm %s563_s2, 1024 }
  0x24   :  { %s41_s15 = sshll.u32 %s459_s14, 4  ;;  %p406_p2 = scmp.ne.s32.totalorder %s563_s2, %s405_s19  ;;  %s42_s15 = int_to_ptr.vmem [resolvable:$true] %s41_s15 }
  0x25   :  { %p409_p3 = scmp.lt.u32.totalorder %s405_s19, %s563_s2 }
  0x27   :  { %p411_p4 = pnand %p409_p3, %p406_p2 }
  0x29   :  { %414 = shalt.err (!%p411_p4)
}
  0x2a   :  { %s415_s24 = scalar_lea.vmem %s42_s15, 1024  ;;  %p420_p6 = scmp.lt.s32.totalorder %s42_s15, %s42_s15 }
  0x2b   :  { %p416_p5 = scmp.ne.s32.totalorder %s42_s15, %s415_s24  ;;  %p421_p7 = scmp.lt.s32.totalorder %s415_s24, %s415_s24 }
  0x2d   :  { %p422_p8 = por %p421_p7, %p420_p6 }
  0x2f   :  { %p423_p9 = pnand %p422_p8, %p416_p5 }
  0x31   :  { %426 = shalt.err (!%p423_p9)
}
  0x32   :  { %s460_s0 = smov 64   ;;  %s461_s18 = smov 4  }
  0x33   :  { %47 = dma.hbm_to_vmem [thread:$0]  %s563_s2, 1024, %s42_s15, [#allocation6], %s460_s0, %s460_s0, %s461_s18  }
  0x34   :  { %449 = dma.done.wait [#allocation3], 256  }
  0x35   :  { %450 = vsyncadd [#allocation3], 4294967040 }
  0x36   :  { %451 = dma.done.wait [#allocation6], 1536  }
  0x37   :  { %452 = vsyncadd [#allocation6], 4294965760  ;;  %v462_v0 = vmov 0   ;;  %v463_v1 = vmov 0.0   ;;  %v343_v2 = vld [vmem:[#allocation5 + $0x4] ss:$8 sps:$4 sm:$0xff]   ;;  %v69_v17 = vlaneseq }
  0x38   :  { %135 = vmatprep.mubr.bf16.mxu0 %v462_v0  ;;  %312 = vmatprep.subr.bf16.mxu1 %v463_v1  ;;  %v345_v3 = vld [vmem:[#allocation5] ss:$8 sps:$4 sm:$0xff]   ;;  %v346_v4 = vld [vmem:[#allocation5 + $0x14] ss:$8 sps:$4 sm:$0xff]   ;;  %v348_v5 = vld [vmem:[#allocation5 + $0x10] ss:$8 sps:$4 sm:$0xff]  }
  0x39   :  { %103 = vmatprep.subr.bf16.mxu0 %v343_v2  ;;  %v60_v6 = vld [vmem:[#allocation2] sm:$0xff]  ;;  %v61_v7 = vld [vmem:[#allocation2 + $0x8] sm:$0xff]  ;;  %vm99_vm0 = vcmask 261120   ;;  %v349_v8 = vld [vmem:[#allocation7] sm:$0xff]   ;;  %vm464_vm1 = vmmov 0   ;;  %v70_v18 = vshrl.u32 %v69_v17, 7 }
  0x3a   :  { %104 = vmatpush1.bf16.msra.mxu0 %v345_v3  ;;  %v62_v9 = vpack.c.bf16 %v61_v7, %v60_v6  ;;  %313 = vmatpush3.bf16.msra.mxu1 %v349_v8  ;;  %v350_v10 = vld [vmem:[#allocation7 + $0x8] sm:$0xff]   ;;  %v351_v11 = vld [vmem:[#allocation7 + $0x10] sm:$0xff]   ;;  %v352_v12 = vld [vmem:[#allocation7 + $0x18] sm:$0xff]   ;;  %s465_s6 = smov [#allocation8]  }
  0x3b   :  { %105 = vmatprep.subr.bf16.mxu0 %v346_v4  ;;  %314 = vmatprep.subr.bf16.mxu1 %v463_v1  ;;  %v353_v13 = vld [vmem:[#allocation7 + $0x20] sm:$0xff]   ;;  %v354_v14 = vld [vmem:[#allocation7 + $0x28] sm:$0xff]   ;;  %v355_v15 = vld [vmem:[#allocation7 + $0x30] sm:$0xff]   ;;  %v75_v19 = vsub.s32 1, %v70_v18  ;;  %v71_v30 = vsub.s32 0, %v70_v18  ;;  %s276_s7 = sshll.u32 %s465_s6, 4  ;;  %s277_s7 = int_to_ptr.vmem [resolvable:$true] %s276_s7 }
  0x3c   :  { %v356_v16 = vld [vmem:[#allocation7 + $0x38] sm:$0xff]   ;;  %328 = vmatprep.mubr.msk.bf16.mxu1 %vm464_vm1, %v463_v1  ;;  %v67_v20 = vld [vmem:[%s564_s3] ss:$2 sm:$0x3]  ;;  %v294_v45 = vld [vmem:[%s564_s3 + $0x1] ss:$0 sm:$0xff]  ;;  %p432_p11 = scmp.lt.s32.totalorder %s277_s7, %s277_s7 }
  0x3d   :  { %v76_v21 = vrot.slane %v67_v20, %v75_v19  ;;  %v72_v31 = vrot.slane %v67_v20, %v71_v30  ;;  %s427_s8 = scalar_lea.vmem %s277_s7, 256 }
  0x3e   :  { %106 = vmatpush1.bf16.msra.mxu0 %v348_v5  ;;  %315 = vmatpush3.bf16.msra.mxu1 %v350_v10  ;;  %p428_p10 = scmp.ne.s32.totalorder %s277_s7, %s427_s8  ;;  %p433_p12 = scmp.lt.s32.totalorder %s427_s8, %s427_s8 }
  0x3f   :  { %316 = vmatprep.subr.bf16.mxu1 %v463_v1 }
  0x40   :  { %p434_p13 = por %p433_p12, %p432_p11 }
  0x41   :  { %293 = vmatmul.mubr.msk.bf16.vlgmr.msra.gmra.mrb[0].mxu0 %vm99_vm0, %v62_v9 }
  0x42   :  { %317 = vmatpush3.bf16.msra.mxu1 %v351_v11  ;;  %p435_p0 = pnand %p434_p13, %p428_p10 }
  0x43   :  { %318 = vmatprep.subr.bf16.mxu1 %v463_v1 }
  0x46   :  { %319 = vmatpush3.bf16.msra.mxu1 %v352_v12 }
  0x47   :  { %320 = vmatprep.subr.bf16.mxu1 %v463_v1 }
  0x4a   :  { %321 = vmatpush3.bf16.msra.mxu1 %v353_v13 }
  0x4b   :  { %322 = vmatprep.subr.bf16.mxu1 %v463_v1 }
  0x4e   :  { %323 = vmatpush3.bf16.msra.mxu1 %v354_v14 }
  0x4f   :  { %324 = vmatprep.subr.bf16.mxu1 %v463_v1 }
  0x52   :  { %325 = vmatpush3.bf16.msra.mxu1 %v355_v15 }
  0x53   :  { %326 = vmatprep.subr.bf16.mxu1 %v463_v1 }
  0x56   :  { %327 = vmatpush3.bf16.msra.mxu1 %v356_v16 }
 0x114   :  { %v137_v22 = vpop.f32.mrb[0].mxu0 }
 0x115   :  { %v139_v23 = vpop.f32.mrb[1].mxu0  ;;  %v138_v36 = vadd.f32 %v137_v22, %v72_v31 }
 0x116   :  { %v140_v24 = vadd.f32 %v139_v23, %v76_v21  ;;  %v141_v25 = vpop.f32.mrb[2].mxu0 }
 0x117   :  { %v143_v26 = vpop.f32.mrb[3].mxu0  ;;  %v142_v40 = vadd.f32 %v141_v25, %v72_v31 }
 0x118   :  { %v148_v27 = vmul.f32 0.70710677, %v140_v24  ;;  %v144_v28 = vadd.f32 %v143_v26, %v76_v21  ;;  %v146_v33 = vmul.f32 0.5, %v140_v24 }
 0x11a   :  { %357 = verf.f32 %v148_v27  ;;  %v149_v29 = vmul.f32 0.70710677, %v144_v28  ;;  %v147_v38 = vmul.f32 0.5, %v144_v28 }
 0x11c   :  { %359 = verf.f32 %v149_v29 }
 0x124   :  { %v358_v32 = vpop.eup %357 }
 0x125   :  { %v152_v34 = vadd.f32 1.0, %v358_v32 }
 0x126   :  { %v360_v35 = vpop.eup %359 }
 0x127   :  { %v154_v37 = vmul.f32 %v152_v34, %v146_v33  ;;  %v153_v39 = vadd.f32 1.0, %v360_v35 }
 0x129   :  { %v155_v41 = vmul.f32 %v153_v39, %v147_v38  ;;  %v156_v42 = vmul.f32 %v154_v37, %v138_v36 }
 0x12b   :  { %v157_v43 = vmul.f32 %v155_v41, %v142_v40 }
 0x12d   :  { %v158_v44 = vpack.c.bf16 %v157_v43, %v156_v42 }
 0x12f   :  { %329 = vmatmul.mubr.bf16.vlgmr.msra.gmra.mrb[0].mxu1 %v158_v44 }
 0x202   :  { %v262_v46 = vpop.f32.mrb[0].mxu1 }
 0x203   :  { %v263_v47 = vadd.f32 %v294_v45, %v262_v46  ;;  %v330_v48 = vpop.f32.mrb[1].mxu1 }
 0x204   :  { %v265_v49 = vpop.f32.mrb[2].mxu1 }
 0x205   :  { %269 = vst [vmem:[#allocation8] sm:$0xff] %v263_v47  ;;  %v266_v50 = vadd.f32 %v294_v45, %v265_v49  ;;  %v331_v51 = vpop.f32.mrb[3].mxu1 }
 0x207   :  { %270 = vst [vmem:[#allocation8 + $0x8] sm:$0xff] %v266_v50 }
 0x208   :  { %438 = shalt.err (!%p435_p0)
}
 0x209   :  { %s439_s10 = scalar_lea.hbm %s565_s4, 256 }
 0x20a   :  { %p440_p1 = scmp.ne.s32.totalorder %s565_s4, %s439_s10  ;;  %p443_p2 = scmp.lt.u32.totalorder %s439_s10, %s565_s4 }
 0x20c   :  { %p445_p3 = pnand %p443_p2, %p440_p1 }
 0x20e   :  { %448 = shalt.err (!%p445_p3)
}
 0x20f   :  { %282 = dma.vmem_to_hbm [thread:$0]  %s277_s7, 256, %s565_s4, [#allocation4], %s457_s27, %s457_s27, %s458_s28  }
 0x210   :  { %453 = dma.done.wait [#allocation4], 256  }
 0x211   :  { %454 = vsyncadd [#allocation4], 4294967040 }
 0x212   :  { %286 = vsyncpa [#allocation3], 1 }
 0x213   :  { %287 = vsyncpa [#allocation6], 1 }
 0x214   :  { %288 = vsyncpa [#allocation4], 1 }

</bundles_post_ra>
